<compile_context>
chip_gen: v7x
topology: tpu7x:2x2x1
jax: 0.10.0
libtpu: 0.0.40
codegen_flags: <defaults>
</compile_context>

<pallas_src>
import functools

import jax
import jax.numpy as jnp
from jax import lax
from jax.experimental import pallas as pl
from jax.experimental.pallas import tpu as pltpu


def _attn_pool_kernel(x_ref, vec_ref, wqkv_ref, wp_ref, sel_ref, selt_ref,
                      o_ref, *, scale, eps):
    # One merging frame per grid step: x_ref block is (1, L, C).
    x = x_ref[0].astype(jnp.float32)                  # [L, C]

    vec = vec_ref[...].astype(jnp.float32)            # [7, C]
    g_q, b_q = vec[0:1, :], vec[1:2, :]
    g_k, b_k = vec[2:3, :], vec[3:4, :]
    g_v, b_v = vec[4:5, :], vec[5:6, :]
    b_p = vec[6:7, :]

    def layernorm(z, g, b):
        mu = jnp.mean(z, axis=-1, keepdims=True)
        zc = z - mu
        var = jnp.mean(zc * zc, axis=-1, keepdims=True)
        return zc * lax.rsqrt(var + eps) * g + b

    # Query = mean over the frame's tokens (then LN); keys/values = LN(tokens).
    x_q = jnp.mean(x, axis=0, keepdims=True)           # [1, C]
    q_n = layernorm(x_q, g_q, b_q)                     # [1, C]
    k_n = layernorm(x, g_k, b_k)                       # [L, C]
    v_n = layernorm(x, g_v, b_v)                       # [L, C]

    w_q = wqkv_ref[0].astype(jnp.float32)              # [C, C]
    w_k = wqkv_ref[1].astype(jnp.float32)
    w_v = wqkv_ref[2].astype(jnp.float32)

    # TODO(synk): qkv_bias=True variant would add per-projection biases here.
    q = jnp.dot(q_n, w_q, preferred_element_type=jnp.float32) * scale   # [1, C]
    k = jnp.dot(k_n, w_k, preferred_element_type=jnp.float32)           # [L, C]
    v = jnp.dot(v_n, w_v, preferred_element_type=jnp.float32)           # [L, C]

    # Per-head scores of the single query via a block-diagonal head selector:
    #   scores[l, h] = sum_d q[h*Dh + d] * k[l, h*Dh + d]
    sel = sel_ref[...].astype(jnp.float32)             # [C, H]
    scores = jnp.dot(k * q, sel, preferred_element_type=jnp.float32)    # [L, H]

    # Softmax over the token (key) axis, per head.
    m = jnp.max(scores, axis=0, keepdims=True)         # [1, H]
    e = jnp.exp(scores - m)                            # [L, H]
    s = jnp.sum(e, axis=0, keepdims=True)              # [1, H]
    attn = e / s                                       # [L, H]

    # Broadcast each head's weights back to its channels; contract over tokens.
    sel_t = selt_ref[...].astype(jnp.float32)          # [H, C]
    attn_full = jnp.dot(attn, sel_t, preferred_element_type=jnp.float32)  # [L, C]
    ctx = jnp.sum(attn_full * v, axis=0, keepdims=True)                    # [1, C]

    w_p = wp_ref[...].astype(jnp.float32)              # [C, C]
    out = jnp.dot(ctx, w_p, preferred_element_type=jnp.float32) + b_p      # [1, C]

    o_ref[...] = out[None, :, :].astype(o_ref.dtype)


def attention_pooling_pallas(x_merging, params, *, num_heads, eps=1e-5):
    """x_merging: [M, L, C] -> pooled tokens [M, C] (fused AttentionPoolingBlock)."""
    M, L, C = x_merging.shape
    head_dim = C // num_heads
    scale = head_dim ** -0.5

    # Pack the per-channel vectors into one lane-dense (7, C) array; cast all
    # parameters to the compute dtype ONCE here (hoisted out of the grid loop).
    vec = jnp.stack([params["g_q"], params["b_q"],
                     params["g_k"], params["b_k"],
                     params["g_v"], params["b_v"],
                     params["b_p"]], axis=0).astype(jnp.float32)           # [7, C]
    w_qkv = jnp.stack([params["w_q"], params["w_k"], params["w_v"]],
                      axis=0).astype(jnp.float32)                           # [3, C, C]
    w_p = params["w_p"].astype(jnp.float32)                                 # [C, C]

    # Block-diagonal head selector and its transpose (built once on host side).
    head_ids = jnp.arange(C, dtype=jnp.int32) // head_dim
    sel = jax.nn.one_hot(head_ids, num_heads, dtype=jnp.float32)            # [C, H]
    sel_t = jnp.transpose(sel)                                              # [H, C]

    kernel = functools.partial(_attn_pool_kernel, scale=scale, eps=eps)

    out3 = pl.pallas_call(
        kernel,
        out_shape=jax.ShapeDtypeStruct((M, 1, C), x_merging.dtype),
        grid_spec=pltpu.PrefetchScalarGridSpec(
            num_scalar_prefetch=0,
            grid=(M,),
            in_specs=[
                # One frame per grid step; (L, C) are full trailing dims.
                pl.BlockSpec((1, L, C), lambda i: (i, 0, 0)),
                # Parameters: same block every step -> VMEM-resident.
                pl.BlockSpec((7, C), lambda i: (0, 0)),
                pl.BlockSpec((3, C, C), lambda i: (0, 0, 0)),
                pl.BlockSpec((C, C), lambda i: (0, 0)),
                pl.BlockSpec((C, num_heads), lambda i: (0, 0)),
                pl.BlockSpec((num_heads, C), lambda i: (0, 0)),
            ],
            out_specs=pl.BlockSpec((1, 1, C), lambda i: (i, 0, 0)),
        ),
        compiler_params=pltpu.CompilerParams(
            dimension_semantics=("parallel",),
        ),
    )(x_merging, vec, w_qkv, w_p, sel, sel_t)
    return out3[:, 0, :]


def temporal_attention_pooling_block(x, T, T_new, frame_mask, params, *, num_heads):
    """x: [B, T*L+1, C]; frame_mask: [B, T] bool with exactly T_new True per row."""
    if T == T_new:
        return x
    B, N, C = x.shape
    L = (N - 1) // T

    cls_token = x[:, :1, :]                             # [B, 1, C]
    body = x[:, 1:, :].reshape(B, T, L, C)              # [B, T, L, C]

    # Order-preserving boolean-mask gather (matches torch's x[mask] semantics).
    origin_idx = jnp.argsort(~frame_mask, axis=1, stable=True)[:, :T_new]
    merging_idx = jnp.argsort(frame_mask, axis=1, stable=True)[:, :T - T_new]
    x_origin = jnp.take_along_axis(body, origin_idx[:, :, None, None], axis=1)
    x_merging = jnp.take_along_axis(body, merging_idx[:, :, None, None], axis=1)
    x_merging = x_merging.reshape(B * (T - T_new), L, C)

    x_merged = attention_pooling_pallas(x_merging, params, num_heads=num_heads)
    x_merged = x_merged.reshape(B, T - T_new, C)

    return jnp.concatenate(
        [cls_token, x_origin.reshape(B, T_new * L, C), x_merged], axis=1)


def _temporal_ref(x, T, T_new, frame_mask, params, *, num_heads, eps=1e-5):
    """Pure-JAX reference mirroring the PyTorch forward (heads split explicitly)."""
    if T == T_new:
        return x
    B, N, C = x.shape
    L = (N - 1) // T
    H = num_heads
    Dh = C // H
    scale = Dh ** -0.5

    cls_token = x[:, :1, :]
    body = x[:, 1:, :].reshape(B, T, L, C)
    origin_idx = jnp.argsort(~frame_mask, axis=1, stable=True)[:, :T_new]
    merging_idx = jnp.argsort(frame_mask, axis=1, stable=True)[:, :T - T_new]
    x_origin = jnp.take_along_axis(body, origin_idx[:, :, None, None], axis=1)
    xm = jnp.take_along_axis(body, merging_idx[:, :, None, None], axis=1)
    xm = xm.reshape(B * (T - T_new), L, C).astype(jnp.float32)
    M = xm.shape[0]

    def ln(z, g, b):
        mu = z.mean(-1, keepdims=True)
        zc = z - mu
        var = (zc * zc).mean(-1, keepdims=True)
        return zc / jnp.sqrt(var + eps) * g + b

    q_n = ln(xm.mean(1, keepdims=True), params["g_q"], params["b_q"])  # [M,1,C]
    k_n = ln(xm, params["g_k"], params["b_k"])                          # [M,L,C]
    v_n = ln(xm, params["g_v"], params["b_v"])

    q = q_n @ params["w_q"]
    k = k_n @ params["w_k"]
    v = v_n @ params["w_v"]

    qh = q.reshape(M, 1, H, Dh).transpose(0, 2, 1, 3) * scale           # [M,H,1,Dh]
    kh = k.reshape(M, L, H, Dh).transpose(0, 2, 1, 3)                   # [M,H,L,Dh]
    vh = v.reshape(M, L, H, Dh).transpose(0, 2, 1, 3)

    attn = jax.nn.softmax(qh @ kh.transpose(0, 1, 3, 2), axis=-1)       # [M,H,1,L]
    ctx = (attn @ vh).transpose(0, 2, 1, 3).reshape(M, 1, C)            # [M,1,C]
    out = (ctx @ params["w_p"] + params["b_p"])[:, 0, :].astype(x.dtype)
    out = out.reshape(B, T - T_new, C)
    return jnp.concatenate(
        [cls_token, x_origin.reshape(B, T_new * L, C), out], axis=1)


if __name__ == "__main__":
    # Small deterministic config consistent with the module:
    # B=2 videos, T=4 frames -> T_new=2 kept, L=16 tokens/frame, C=128, 8 heads.
    B, T, T_new, L, C, H = 2, 4, 2, 16, 128, 8
    N = T * L + 1

    key = jax.random.PRNGKey(0)
    kx, kmask, kw = jax.random.split(key, 3)
    wk = jax.random.split(kw, 11)

    x = jax.random.normal(kx, (B, N, C), dtype=jnp.float32)

    std = 0.02
    params = {
        "g_q": 1.0 + 0.01 * jax.random.normal(wk[0], (C,), jnp.float32),
        "b_q": 0.01 * jax.random.normal(wk[1], (C,), jnp.float32),
        "g_k": 1.0 + 0.01 * jax.random.normal(wk[2], (C,), jnp.float32),
        "b_k": 0.01 * jax.random.normal(wk[3], (C,), jnp.float32),
        "g_v": 1.0 + 0.01 * jax.random.normal(wk[4], (C,), jnp.float32),
        "b_v": 0.01 * jax.random.normal(wk[5], (C,), jnp.float32),
        # Linear weights stored as [in, out] (transpose of torch's [out, in]).
        "w_q": std * jax.random.normal(wk[6], (C, C), jnp.float32),
        "w_k": std * jax.random.normal(wk[7], (C, C), jnp.float32),
        "w_v": std * jax.random.normal(wk[8], (C, C), jnp.float32),
        "w_p": std * jax.random.normal(wk[9], (C, C), jnp.float32),
        "b_p": 0.01 * jax.random.normal(wk[10], (C,), jnp.float32),
    }

    # generate_mask(): one random choice of T_new frames, tiled across the batch
    # (the PyTorch code uses host np.random; reproduced deterministically here).
    chosen = jax.random.choice(kmask, T, shape=(T_new,), replace=False)
    frame_mask = jnp.zeros((B, T), dtype=bool).at[:, chosen].set(True)

    out = temporal_attention_pooling_block(x, T, T_new, frame_mask, params,
                                           num_heads=H)
    jax.block_until_ready(out)
    assert out.shape == (B, 1 + T_new * L + (T - T_new), C)
    assert out.dtype == x.dtype

    ref = _temporal_ref(x, T, T_new, frame_mask, params, num_heads=H)
    err = float(jnp.max(jnp.abs(out - ref)))
    assert err < 2e-2, f"max abs err {err}"

    # T == T_new fast path is identity.
    out_same = temporal_attention_pooling_block(x, T, T, frame_mask, params,
                                                num_heads=H)
    assert out_same.shape == x.shape

    print("KERNEL_OK")
</pallas_src>

<mosaic_0001>
module attributes {stable_mosaic.version = 11 : i64} {
  func.func @_attn_pool_kernel(%arg0: i32, %arg1: memref<1x16x128xf32, #tpu.memory_space<vmem>>, %arg2: memref<7x128xf32, #tpu.memory_space<vmem>>, %arg3: memref<3x128x128xf32, #tpu.memory_space<vmem>>, %arg4: memref<128x128xf32, #tpu.memory_space<vmem>>, %arg5: memref<128x8xf32, #tpu.memory_space<vmem>>, %arg6: memref<8x128xf32, #tpu.memory_space<vmem>>, %arg7: memref<1x1x128xf32, #tpu.memory_space<vmem>>) attributes {dimension_semantics = [#tpu.dimension_semantics<parallel>], iteration_bounds = array<i64: 4>, scalar_prefetch = 0 : i64, scratch_operands = 0 : i64, tpu.core_type = #tpu.core_type<tc>, window_params = [{transform_indices = @transform_0, window_bounds = array<i64: 1, 16, 128>}, {pipeline_mode = #tpu.pipeline_mode<synchronous>, transform_indices = @transform_1, window_bounds = array<i64: 7, 128>}, {pipeline_mode = #tpu.pipeline_mode<synchronous>, transform_indices = @transform_2, window_bounds = array<i64: 3, 128, 128>}, {pipeline_mode = #tpu.pipeline_mode<synchronous>, transform_indices = @transform_3, window_bounds = array<i64: 128, 128>}, {pipeline_mode = #tpu.pipeline_mode<synchronous>, transform_indices = @transform_4, window_bounds = array<i64: 128, 8>}, {pipeline_mode = #tpu.pipeline_mode<synchronous>, transform_indices = @transform_5, window_bounds = array<i64: 8, 128>}, {transform_indices = @transform_6, window_bounds = array<i64: 1, 1, 128>}]} {
    %c0 = arith.constant 0 : index
    %c0_0 = arith.constant 0 : index
    %c0_1 = arith.constant 0 : index
    %0 = vector.load %arg1[%c0, %c0_0, %c0_1] : memref<1x16x128xf32, #tpu.memory_space<vmem>>, vector<1x16x128xf32>
    %1 = vector.shape_cast %0 : vector<1x16x128xf32> to vector<16x128xf32>
    %c0_2 = arith.constant 0 : index
    %c0_3 = arith.constant 0 : index
    %2 = vector.load %arg2[%c0_2, %c0_3] : memref<7x128xf32, #tpu.memory_space<vmem>>, vector<7x128xf32>
    %3 = vector.extract_strided_slice %2 {offsets = [0, 0], sizes = [1, 128], strides = [1, 1]} : vector<7x128xf32> to vector<1x128xf32>
    %4 = vector.extract_strided_slice %2 {offsets = [1, 0], sizes = [1, 128], strides = [1, 1]} : vector<7x128xf32> to vector<1x128xf32>
    %5 = vector.extract_strided_slice %2 {offsets = [2, 0], sizes = [1, 128], strides = [1, 1]} : vector<7x128xf32> to vector<1x128xf32>
    %6 = vector.extract_strided_slice %2 {offsets = [3, 0], sizes = [1, 128], strides = [1, 1]} : vector<7x128xf32> to vector<1x128xf32>
    %7 = vector.extract_strided_slice %2 {offsets = [4, 0], sizes = [1, 128], strides = [1, 1]} : vector<7x128xf32> to vector<1x128xf32>
    %8 = vector.extract_strided_slice %2 {offsets = [5, 0], sizes = [1, 128], strides = [1, 1]} : vector<7x128xf32> to vector<1x128xf32>
    %9 = vector.extract_strided_slice %2 {offsets = [6, 0], sizes = [1, 128], strides = [1, 1]} : vector<7x128xf32> to vector<1x128xf32>
    %cst = arith.constant dense<0.000000e+00> : vector<128xf32>
    %10 = vector.multi_reduction <add>, %1, %cst [0] : vector<16x128xf32> to vector<128xf32>
    %11 = vector.shape_cast %10 : vector<128xf32> to vector<1x128xf32>
    %cst_4 = arith.constant 1.600000e+01 : f32
    %12 = vector.broadcast %cst_4 : f32 to vector<1x128xf32>
    %13 = arith.divf %11, %12 : vector<1x128xf32>
    %cst_5 = arith.constant dense<0.000000e+00> : vector<1xf32>
    %14 = vector.multi_reduction <add>, %13, %cst_5 [1] : vector<1x128xf32> to vector<1xf32>
    %15 = vector.shape_cast %14 : vector<1xf32> to vector<1x1xf32>
    %cst_6 = arith.constant 1.280000e+02 : f32
    %16 = vector.broadcast %cst_6 : f32 to vector<1x1xf32>
    %17 = arith.divf %15, %16 : vector<1x1xf32>
    %18 = vector.broadcast %17 : vector<1x1xf32> to vector<1x128xf32>
    %19 = arith.subf %13, %18 : vector<1x128xf32>
    %20 = arith.mulf %19, %19 : vector<1x128xf32>
    %cst_7 = arith.constant dense<0.000000e+00> : vector<1xf32>
    %21 = vector.multi_reduction <add>, %20, %cst_7 [1] : vector<1x128xf32> to vector<1xf32>
    %22 = vector.shape_cast %21 : vector<1xf32> to vector<1x1xf32>
    %cst_8 = arith.constant 1.280000e+02 : f32
    %23 = vector.broadcast %cst_8 : f32 to vector<1x1xf32>
    %24 = arith.divf %22, %23 : vector<1x1xf32>
    %cst_9 = arith.constant 9.99999974E-6 : f32
    %25 = vector.broadcast %cst_9 : f32 to vector<1x1xf32>
    %26 = arith.addf %24, %25 : vector<1x1xf32>
    %27 = math.rsqrt %26 : vector<1x1xf32>
    %28 = vector.broadcast %27 : vector<1x1xf32> to vector<1x128xf32>
    %29 = arith.mulf %19, %28 : vector<1x128xf32>
    %30 = arith.mulf %29, %3 : vector<1x128xf32>
    %31 = arith.addf %30, %4 : vector<1x128xf32>
    %cst_10 = arith.constant dense<0.000000e+00> : vector<16xf32>
    %32 = vector.multi_reduction <add>, %1, %cst_10 [1] : vector<16x128xf32> to vector<16xf32>
    %33 = vector.shape_cast %32 : vector<16xf32> to vector<16x1xf32>
    %cst_11 = arith.constant 1.280000e+02 : f32
    %34 = vector.broadcast %cst_11 : f32 to vector<16x1xf32>
    %35 = arith.divf %33, %34 : vector<16x1xf32>
    %36 = vector.broadcast %35 : vector<16x1xf32> to vector<16x128xf32>
    %37 = arith.subf %1, %36 : vector<16x128xf32>
    %38 = arith.mulf %37, %37 : vector<16x128xf32>
    %cst_12 = arith.constant dense<0.000000e+00> : vector<16xf32>
    %39 = vector.multi_reduction <add>, %38, %cst_12 [1] : vector<16x128xf32> to vector<16xf32>
    %40 = vector.shape_cast %39 : vector<16xf32> to vector<16x1xf32>
    %cst_13 = arith.constant 1.280000e+02 : f32
    %41 = vector.broadcast %cst_13 : f32 to vector<16x1xf32>
    %42 = arith.divf %40, %41 : vector<16x1xf32>
    %cst_14 = arith.constant 9.99999974E-6 : f32
    %43 = vector.broadcast %cst_14 : f32 to vector<16x1xf32>
    %44 = arith.addf %42, %43 : vector<16x1xf32>
    %45 = math.rsqrt %44 : vector<16x1xf32>
    %46 = vector.broadcast %45 : vector<16x1xf32> to vector<16x128xf32>
    %47 = arith.mulf %37, %46 : vector<16x128xf32>
    %48 = vector.broadcast %5 : vector<1x128xf32> to vector<16x128xf32>
    %49 = arith.mulf %47, %48 : vector<16x128xf32>
    %50 = vector.broadcast %6 : vector<1x128xf32> to vector<16x128xf32>
    %51 = arith.addf %49, %50 : vector<16x128xf32>
    %cst_15 = arith.constant dense<0.000000e+00> : vector<16xf32>
    %52 = vector.multi_reduction <add>, %1, %cst_15 [1] : vector<16x128xf32> to vector<16xf32>
    %53 = vector.shape_cast %52 : vector<16xf32> to vector<16x1xf32>
    %cst_16 = arith.constant 1.280000e+02 : f32
    %54 = vector.broadcast %cst_16 : f32 to vector<16x1xf32>
    %55 = arith.divf %53, %54 : vector<16x1xf32>
    %56 = vector.broadcast %55 : vector<16x1xf32> to vector<16x128xf32>
    %57 = arith.subf %1, %56 : vector<16x128xf32>
    %58 = arith.mulf %57, %57 : vector<16x128xf32>
    %cst_17 = arith.constant dense<0.000000e+00> : vector<16xf32>
    %59 = vector.multi_reduction <add>, %58, %cst_17 [1] : vector<16x128xf32> to vector<16xf32>
    %60 = vector.shape_cast %59 : vector<16xf32> to vector<16x1xf32>
    %cst_18 = arith.constant 1.280000e+02 : f32
    %61 = vector.broadcast %cst_18 : f32 to vector<16x1xf32>
    %62 = arith.divf %60, %61 : vector<16x1xf32>
    %cst_19 = arith.constant 9.99999974E-6 : f32
    %63 = vector.broadcast %cst_19 : f32 to vector<16x1xf32>
    %64 = arith.addf %62, %63 : vector<16x1xf32>
    %65 = math.rsqrt %64 : vector<16x1xf32>
    %66 = vector.broadcast %65 : vector<16x1xf32> to vector<16x128xf32>
    %67 = arith.mulf %57, %66 : vector<16x128xf32>
    %68 = vector.broadcast %7 : vector<1x128xf32> to vector<16x128xf32>
    %69 = arith.mulf %67, %68 : vector<16x128xf32>
    %70 = vector.broadcast %8 : vector<1x128xf32> to vector<16x128xf32>
    %71 = arith.addf %69, %70 : vector<16x128xf32>
    %c0_20 = arith.constant 0 : index
    %c0_21 = arith.constant 0 : index
    %c0_22 = arith.constant 0 : index
    %72 = vector.load %arg3[%c0_20, %c0_21, %c0_22] : memref<3x128x128xf32, #tpu.memory_space<vmem>>, vector<1x128x128xf32>
    %73 = vector.shape_cast %72 : vector<1x128x128xf32> to vector<128x128xf32>
    %c1 = arith.constant 1 : index
    %c0_23 = arith.constant 0 : index
    %c0_24 = arith.constant 0 : index
    %74 = vector.load %arg3[%c1, %c0_23, %c0_24] : memref<3x128x128xf32, #tpu.memory_space<vmem>>, vector<1x128x128xf32>
    %75 = vector.shape_cast %74 : vector<1x128x128xf32> to vector<128x128xf32>
    %c2 = arith.constant 2 : index
    %c0_25 = arith.constant 0 : index
    %c0_26 = arith.constant 0 : index
    %76 = vector.load %arg3[%c2, %c0_25, %c0_26] : memref<3x128x128xf32, #tpu.memory_space<vmem>>, vector<1x128x128xf32>
    %77 = vector.shape_cast %76 : vector<1x128x128xf32> to vector<128x128xf32>
    %cst_27 = arith.constant dense<0.000000e+00> : vector<1x128xf32>
    %78 = tpu.matmul %31, %73, %cst_27 {dimension_numbers = #tpu.dot_dimension_numbers<[1], [0], [0], [1], [0, 0, 1, 1], [], []>} : vector<1x128xf32>, vector<128x128xf32>, vector<1x128xf32> -> vector<1x128xf32>
    %cst_28 = arith.constant 2.500000e-01 : f32
    %79 = vector.broadcast %cst_28 : f32 to vector<1x128xf32>
    %80 = arith.mulf %78, %79 : vector<1x128xf32>
    %cst_29 = arith.constant dense<0.000000e+00> : vector<16x128xf32>
    %81 = tpu.matmul %51, %75, %cst_29 {dimension_numbers = #tpu.dot_dimension_numbers<[1], [0], [0], [1], [0, 0, 1, 1], [], []>} : vector<16x128xf32>, vector<128x128xf32>, vector<16x128xf32> -> vector<16x128xf32>
    %cst_30 = arith.constant dense<0.000000e+00> : vector<16x128xf32>
    %82 = tpu.matmul %71, %77, %cst_30 {dimension_numbers = #tpu.dot_dimension_numbers<[1], [0], [0], [1], [0, 0, 1, 1], [], []>} : vector<16x128xf32>, vector<128x128xf32>, vector<16x128xf32> -> vector<16x128xf32>
    %c0_31 = arith.constant 0 : index
    %c0_32 = arith.constant 0 : index
    %83 = vector.load %arg5[%c0_31, %c0_32] : memref<128x8xf32, #tpu.memory_space<vmem>>, vector<128x8xf32>
    %84 = vector.broadcast %80 : vector<1x128xf32> to vector<16x128xf32>
    %85 = arith.mulf %81, %84 : vector<16x128xf32>
    %cst_33 = arith.constant dense<0.000000e+00> : vector<16x8xf32>
    %86 = tpu.matmul %85, %83, %cst_33 {dimension_numbers = #tpu.dot_dimension_numbers<[1], [0], [0], [1], [0, 0, 1, 1], [], []>} : vector<16x128xf32>, vector<128x8xf32>, vector<16x8xf32> -> vector<16x8xf32>
    %cst_34 = arith.constant dense<0xFF800000> : vector<8xf32>
    %87 = vector.multi_reduction <maximumf>, %86, %cst_34 [0] : vector<16x8xf32> to vector<8xf32>
    %88 = vector.shape_cast %87 : vector<8xf32> to vector<1x8xf32>
    %89 = vector.broadcast %88 : vector<1x8xf32> to vector<16x8xf32>
    %90 = arith.subf %86, %89 : vector<16x8xf32>
    %91 = math.exp %90 : vector<16x8xf32>
    %cst_35 = arith.constant dense<0.000000e+00> : vector<8xf32>
    %92 = vector.multi_reduction <add>, %91, %cst_35 [0] : vector<16x8xf32> to vector<8xf32>
    %93 = vector.shape_cast %92 : vector<8xf32> to vector<1x8xf32>
    %94 = vector.broadcast %93 : vector<1x8xf32> to vector<16x8xf32>
    %95 = arith.divf %91, %94 : vector<16x8xf32>
    %c0_36 = arith.constant 0 : index
    %c0_37 = arith.constant 0 : index
    %96 = vector.load %arg6[%c0_36, %c0_37] : memref<8x128xf32, #tpu.memory_space<vmem>>, vector<8x128xf32>
    %cst_38 = arith.constant dense<0.000000e+00> : vector<16x128xf32>
    %97 = tpu.matmul %95, %96, %cst_38 {dimension_numbers = #tpu.dot_dimension_numbers<[1], [0], [0], [1], [0, 0, 1, 1], [], []>} : vector<16x8xf32>, vector<8x128xf32>, vector<16x128xf32> -> vector<16x128xf32>
    %98 = arith.mulf %97, %82 : vector<16x128xf32>
    %cst_39 = arith.constant dense<0.000000e+00> : vector<128xf32>
    %99 = vector.multi_reduction <add>, %98, %cst_39 [0] : vector<16x128xf32> to vector<128xf32>
    %100 = vector.shape_cast %99 : vector<128xf32> to vector<1x128xf32>
    %c0_40 = arith.constant 0 : index
    %c0_41 = arith.constant 0 : index
    %101 = vector.load %arg4[%c0_40, %c0_41] : memref<128x128xf32, #tpu.memory_space<vmem>>, vector<128x128xf32>
    %cst_42 = arith.constant dense<0.000000e+00> : vector<1x128xf32>
    %102 = tpu.matmul %100, %101, %cst_42 {dimension_numbers = #tpu.dot_dimension_numbers<[1], [0], [0], [1], [0, 0, 1, 1], [], []>} : vector<1x128xf32>, vector<128x128xf32>, vector<1x128xf32> -> vector<1x128xf32>
    %103 = arith.addf %102, %9 : vector<1x128xf32>
    %104 = vector.shape_cast %103 : vector<1x128xf32> to vector<1x1x128xf32>
    %c0_43 = arith.constant 0 : index
    %c0_44 = arith.constant 0 : index
    %c0_45 = arith.constant 0 : index
    %105 = vector.load %arg7[%c0_43, %c0_44, %c0_45] : memref<1x1x128xf32, #tpu.memory_space<vmem>>, vector<1x1x128xf32>
    tpu.vector_store %arg7[%c0_43, %c0_44, %c0_45], %104 {strides = array<i32>} : memref<1x1x128xf32, #tpu.memory_space<vmem>>, vector<1x1x128xf32>,
    return
  }
  func.func @transform_0(%arg0: i32) -> (i32, i32, i32) {
    %c0_i32 = arith.constant 0 : i32
    %c0_i32_0 = arith.constant 0 : i32
    %c0_i32_1 = arith.constant 0 : i32
    return %arg0, %c0_i32, %c0_i32_0 : i32, i32, i32
  }
  func.func @transform_1(%arg0: i32) -> (i32, i32) {
    %c0_i32 = arith.constant 0 : i32
    %c0_i32_0 = arith.constant 0 : i32
    %c0_i32_1 = arith.constant 0 : i32
    return %c0_i32, %c0_i32_0 : i32, i32
  }
  func.func @transform_2(%arg0: i32) -> (i32, i32, i32) {
    %c0_i32 = arith.constant 0 : i32
    %c0_i32_0 = arith.constant 0 : i32
    %c0_i32_1 = arith.constant 0 : i32
    %c0_i32_2 = arith.constant 0 : i32
    return %c0_i32, %c0_i32_0, %c0_i32_1 : i32, i32, i32
  }
  func.func @transform_3(%arg0: i32) -> (i32, i32) {
    %c0_i32 = arith.constant 0 : i32
    %c0_i32_0 = arith.constant 0 : i32
    %c0_i32_1 = arith.constant 0 : i32
    return %c0_i32, %c0_i32_0 : i32, i32
  }
  func.func @transform_4(%arg0: i32) -> (i32, i32) {
    %c0_i32 = arith.constant 0 : i32
    %c0_i32_0 = arith.constant 0 : i32
    %c0_i32_1 = arith.constant 0 : i32
    return %c0_i32, %c0_i32_0 : i32, i32
  }
  func.func @transform_5(%arg0: i32) -> (i32, i32) {
    %c0_i32 = arith.constant 0 : i32
    %c0_i32_0 = arith.constant 0 : i32
    %c0_i32_1 = arith.constant 0 : i32
    return %c0_i32, %c0_i32_0 : i32, i32
  }
  func.func @transform_6(%arg0: i32) -> (i32, i32, i32) {
    %c0_i32 = arith.constant 0 : i32
    %c0_i32_0 = arith.constant 0 : i32
    %c0_i32_1 = arith.constant 0 : i32
    return %arg0, %c0_i32, %c0_i32_0 : i32, i32, i32
  }
}

</mosaic_0001>

<bundles_post_ra>
// kernel: tpu_custom_call.1
= control target key start
LH: loop header
LB: loop body
LE: loop exit
PB: predicated region body
PF: predicated region fallthrough
CT: control target
= control target key end

     0   :  { %11 = vsyncpa [#allocation3], 0  ;;  %s2080_s0 = inlined_call_operand.hbm [shape: f32[4,16,128], index: 0, kind: input, shape index: {}]   ;;  %s2081_s1 = inlined_call_operand.vmem [shape: f32[7,128], index: 1, kind: input, shape index: {}]   ;;  %s2082_s2 = inlined_call_operand.hbm [shape: f32[3,128,128], index: 2, kind: input, shape index: {}]   ;;  %s2083_s3 = inlined_call_operand.vmem [shape: f32[128,128], index: 3, kind: input, shape index: {}]   ;;  %s2084_s4 = inlined_call_operand.vmem [shape: f32[128,8], index: 4, kind: input, shape index: {}]   ;;  %s2085_s5 = inlined_call_operand.vmem [shape: f32[8,128], index: 5, kind: input, shape index: {}]   ;;  %s2086_s6 = inlined_call_operand.hbm [shape: f32[4,1,128], index: 6, kind: output, shape index: {}]  }
   0x1   :  { %13 = vsyncpa [#allocation3 + $0x1], 0 }
   0x2   :  { %14 = vsyncpa [#allocation6], 0 }
   0x3   :  { %15 = vsyncpa [#allocation4], 0 }
   0x4   :  { %17 = vsyncpa [#allocation4 + $0x1], 0  ;;  %s1702_s21 = smov 0   ;;  %s1704_s22 = smov 0  }
   0x5   :  { %s1706_s23 = smov 0   ;;  %s1708_s24 = smov 0  }
   0x6 LB: > { %s1723_s25 = sadd.s32 4294967295, %s1657_s24   ;;  %s1024_s26 = sadd.s32 4294967294, %s1657_s24   ;;  %s1657_s24 = sphi %s1708_s24, %s2105_s24   ;;  %s1653_s23 = sphi %s1706_s23, %s2104_s23   ;;  %s1649_s22 = sphi %s1704_s22, %s2103_s22   ;;  %s1645_s21 = sphi %s1702_s21, %s2102_s21  }
   0x7   : > { %p43_p0 = scmp.ne.s32.totalorder %s1649_s22, %s1645_s21  ;;  %p2087_p1 = scmp.eq.s32.totalorder %s1723_s25, 0 }
   0x8   : > { %p178_p3 = scmp.eq.s32.totalorder %s1024_s26, 3  ;;  %p1025_p5 = scmp.ge.s32.totalorder %s1657_s24, 1 }
   0x9   : > { %p1732_p4 = por %p2087_p1, %p43_p0  ;;  %p185_p7 = scmp.lt.s32.totalorder %s1657_s24, 5 }
   0xa   : > { %p1737_p6 = por %p178_p3, %p43_p0  ;;  %s1659_s30 = smov [#allocation5]  }
   0xb   : > { %s2090_s27 = scalar_select %p1732_p4, 1, 0 }
   0xc   : > { %s2091_s28 = scalar_select %p1737_p6, 1, 0 }
   0xd   : > { %p1742_p8 = pnand %p1025_p5, %p185_p7  ;;  %s200_s7 = sshll.u32 %s1659_s30, 4  ;;  %s201_s7 = int_to_ptr.vmem [resolvable:$true] %s200_s7 }
   0xe   : > { %s1755_s9 = sadd.s32 1, %s1657_s24   ;;  %s30_s10 = sadd.s32 1, %s1653_s23 }
   0xf   : > { %s2092_s29 = scalar_select %p1742_p8, 1, 0 }
  0x10   : > { %p1463_p9 = pneg %p1742_p8  ;;  %s27_s11 = ssub.s32 %s1657_s24, %s1755_s9 }
  0x11   : > { %s1529_s14 = scalar_lea.hbm %s2082_s2, 6144 }
  0x12   : > { %p1750_p10 = pnand %p1463_p9, %p2087_p1  ;;  %p1530_p11 = scmp.ne.s32.totalorder %s2082_s2, %s1529_s14 }
  0x13   : > { %p1536_p3 = scmp.lt.u32.totalorder %s1529_s14, %s2082_s2 }
  0x14   : > { %p1531_p12 = pneg %p1750_p10 }
  0x16   : > { %p1532_p13 = pnand %p1531_p12, %p1530_p11 }
  0x18   : > { %p1533_p0 = pneg %p1532_p13 }
  0x1a   : > { %p1538_p5 = pnand %p1536_p3, %p1533_p0 }
  0x1c   : > { %1541 = shalt.err (!%p1538_p5)
}
  0x1d   : > { %s1542_s19 = scalar_lea.vmem %s201_s7, 6144  ;;  %p1550_p2 = scmp.lt.s32.totalorder %s201_s7, %s201_s7 }
  0x1e   : > { %p1543_p7 = scmp.ne.s32.totalorder %s201_s7, %s1542_s19  ;;  %p1551_p6 = scmp.lt.s32.totalorder %s1542_s19, %s1542_s19 }
  0x20   : > { %p1545_p9 = pnand %p1543_p7, %p1531_p12  ;;  %p1552_p4 = por %p1551_p6, %p1550_p2 }
  0x22   : > { %p1546_p1 = pneg %p1545_p9 }
  0x24   : > { %p1553_p8 = pnand %p1552_p4, %p1546_p1 }
  0x26   : > { %1556 = shalt.err (!%p1553_p8)
}
  0x27   : > { %s1660_s20 = smov 128   ;;  %s1661_s26 = smov 8  }
  0x28   : > { %1466 = dma.hbm_to_vmem [thread:$0]  (!%p1750_p10), %s2082_s2, 6144, %s201_s7, [#allocation6], %s1660_s20, %s1660_s20, %s1661_s26  }
  0x29   : > { %p28_p1 = scmp.eq.s32.totalorder %s27_s11, 0  ;;  %p37_p2 = scmp.ne.s32.totalorder %s1653_s23, %s1649_s22 }
  0x2a   : > { %p38_p4 = scmp.eq.s32.totalorder %s1657_s24, 0  ;;  %p1476_p6 = scmp.lt.s32.totalorder %s1657_s24, 4 }
  0x2b   : > { %s1784_s13 = scalar_select %p28_p1, %s1653_s23, %s30_s10  }
  0x2c   : > { %p39_p8 = por %p38_p4, %p37_p2  ;;  %p2094_p11 = scmp.eq.s32.totalorder %s1723_s25, 3 }
  0x2d   : > { %s223_s8 = sand.u32 1, %s1653_s23   ;;  %s1039_s15 = sshll.u32 %s1657_s24, 8 }
  0x2e   : > { %p1788_p12 = por %p2094_p11, %p37_p2  ;;  %s1028_s16 = sshll.u32 %s223_s8, 4 }
  0x2f   : > { %s1797_s19 = scalar_lea.hbm %s2080_s0, %s1039_s15  ;;  %s227_s7 = scalar_lea.vmem [#allocation2], %s1028_s16 }
  0x30   : > { %s234_s10 = sshll.u32 %s227_s7, 4  ;;  %p1799_p10 = pnand %p1476_p6, %p39_p8  ;;  %s1803_s10 = int_to_ptr.vmem [resolvable:$true] %s234_s10 }
  0x31   : > { %s1805_s30 = scalar_lea.sflag [#allocation3], %s223_s8  ;;  %s1557_s12 = scalar_lea.hbm %s1797_s19, 256 }
  0x32   : > { %p1558_p13 = scmp.ne.s32.totalorder %s1797_s19, %s1557_s12  ;;  %p1559_p0 = pneg %p1799_p10 }
  0x33   : > { %s1562_s17 = scalar_lea.hbm %s2080_s0, 1024  ;;  %p1563_p7 = scmp.lt.u32.totalorder %s1797_s19, %s2080_s0 }
  0x34   : > { %p1560_p3 = pnand %p1559_p0, %p1558_p13  ;;  %p1564_p9 = scmp.lt.u32.totalorder %s1562_s17, %s1557_s12 }
  0x35   : > { %p1566_p2 = scmp.lt.u32.totalorder %s1557_s12, %s1797_s19 }
  0x36   : > { %p1561_p5 = pneg %p1560_p3  ;;  %p1565_p1 = por %p1564_p9, %p1563_p7 }
  0x38   : > { %p1567_p4 = por %p1566_p2, %p1565_p1 }
  0x3a   : > { %p1568_p6 = pnand %p1567_p4, %p1561_p5 }
  0x3c   : > { %1571 = shalt.err (!%p1568_p6)
}
  0x3d   : > { %s1572_s8 = scalar_lea.vmem %s1803_s10, 256  ;;  %s1662_s15 = smov [#allocation2]  }
  0x3e   : > { %p1573_p8 = scmp.ne.s32.totalorder %s1803_s10, %s1572_s8  ;;  %s1577_s16 = sshll.u32 %s1662_s15, 4  ;;  %s1578_s16 = int_to_ptr.vmem [resolvable:$false] %s1577_s16 }
  0x3f   : > { %s1579_s18 = scalar_lea.vmem %s1578_s16, 512  ;;  %p1580_p3 = scmp.lt.s32.totalorder %s1803_s10, %s1578_s16 }
  0x40   : > { %p1575_p11 = pnand %p1573_p8, %p1559_p0  ;;  %p1581_p7 = scmp.lt.s32.totalorder %s1579_s18, %s1572_s8 }
  0x42   : > { %p1576_p13 = pneg %p1575_p11  ;;  %p1582_p9 = por %p1581_p7, %p1580_p3 }
  0x44   : > { %p1583_p1 = pnand %p1582_p9, %p1576_p13 }
  0x46   : > { %1586 = shalt.err (!%p1583_p1)
}
  0x47   : > { %1470 = dma.hbm_to_vmem [thread:$0]  (!%p1799_p10), %s1797_s19, 256, %s1803_s10, %s1805_s30, %s1660_s20, %s1660_s20, %s1661_s26  }
  0x48   : > { %p2097_p0 = scmp.ne.s32.totalorder %s2092_s29, 0 }
  0x49   : > { %s1839_s12 = sand.u32 (!%p2097_p0), 1, %s1649_s22   ;;  %p2098_p5 = scmp.ne.s32.totalorder (!%p2097_p0), %s2090_s27, 0 }
  0x4a   : > { %246 = sbr.rel (%p2097_p0) target bundleno = 1365 (0x555), region = 44  ;;  %s1032_s17 = sshll.u32 (!%p2097_p0), %s1839_s12, 4 }
  0x4b   : > { %s249_s7 = scalar_lea.sflag (!%p2097_p0), [#allocation3], %s1839_s12  ;;  %s252_s8 = scalar_lea.vmem (!%p2097_p0), [#allocation2], %s1032_s17 }
  0x51   : > { %1632 = dma.done.wait (%p2098_p5), %s249_s7, 256  }
  0x52   : > { %1634 = vsyncadd (%p2098_p5), %s249_s7, 4294967040  ;;  %p2099_p2 = scmp.eq.s32.totalorder %s1723_s25, 0 }
  0x54   : > { %1636 = dma.done.wait (%p2099_p2), [#allocation6], 6144   ;;  %p2100_p10 = pmov %p2099_p2 }
  0x55   : > { %v284_v0 = vld [vmem:[%s252_s8] sm:$0xff]  ;;  %v285_v1 = vld [vmem:[%s252_s8 + $0x8] sm:$0xff]  ;;  %v1663_v13 = vmov 0.0|0.0   ;;  %vm1664_vm0 = vmmov 0   ;;  %v1665_v62 = vmov 0.0   ;;  %vm727_vm1 = vcmask 64512  }
  0x56   : > { %1638 = vsyncadd (%p2100_p10), [#allocation6], 4294961152  ;;  %v287_v2 = vadd.f32 %v285_v1, %v284_v0  ;;  %315 = vadd.xlane.f32.xlu1 %v285_v1  ;;  %v359_v10 = vld [vmem:[#allocation5] sm:$0xff]  ;;  %v360_v11 = vld [vmem:[#allocation5 + $0x8] sm:$0xff]  ;;  %1311 = vmatprep.subr.bf16.mxu0 %v1663_v13  ;;  %s1036_s7 = sshll.u32 %s1723_s25, 4  ;;  %s283_s8 = scalar_lea.vmem [#allocation7], %s1839_s12 }
  0x57   : > { %v361_v12 = vld [vmem:[#allocation5 + $0x10] sm:$0xff]  ;;  %v1312_v14 = vpack.c.bf16 %v360_v11, %v359_v10  ;;  %v362_v15 = vld [vmem:[#allocation5 + $0x18] sm:$0xff]  ;;  %v376_v16 = vld [vmem:[#allocation5 + $0x80] sm:$0xff]  ;;  %1163 = vmatprep.mubr.msk.f32.mxu0 %vm1664_vm0, %v1665_v62  ;;  %s948_s27 = sshll.u32 %s283_s8, 4  ;;  %s2037_s26 = scalar_lea.hbm %s2086_s6, %s1036_s7  ;;  %s2039_s27 = int_to_ptr.vmem [resolvable:$true] %s948_s27 }
  0x58   : > { %v288_v3 = vrot.slane %v287_v2, 4  ;;  %v377_v17 = vld [vmem:[#allocation5 + $0x88] sm:$0xff]  ;;  %v378_v19 = vld [vmem:[#allocation5 + $0x90] sm:$0xff]  ;;  %v1315_v20 = vpack.c.bf16 %v362_v15, %v361_v12  ;;  %v379_v21 = vld [vmem:[#allocation5 + $0x98] sm:$0xff]  ;;  %s936_s19 = scalar_lea.sflag [#allocation4], %s1839_s12  ;;  %s1587_s10 = scalar_lea.vmem %s2039_s27, 16 }
  0x59   : > { %v1335_v18 = vpack.c.bf16 %v377_v17, %v376_v16  ;;  %1313 = vmatpush3.bf16.msra.mxu0 %v1312_v14  ;;  %v363_v22 = vld [vmem:[#allocation5 + $0x20] sm:$0xff]  ;;  %v364_v23 = vld [vmem:[#allocation5 + $0x28] sm:$0xff]  ;;  %v1339_v24 = vpack.c.bf16 %v379_v21, %v378_v19  ;;  %v365_v38 = vld [vmem:[#allocation5 + $0x30] sm:$0xff]  ;;  %p1588_p4 = scmp.ne.s32.totalorder %s2039_s27, %s1587_s10  ;;  %s1666_s25 = smov [#allocation7]  }
  0x5a   : > { %v289_v4 = vadd.f32 %v288_v3, %v287_v2  ;;  %1314 = vmatprep.subr.bf16.mxu0 %v1663_v13  ;;  %v1318_v25 = vpack.c.bf16 %v364_v23, %v363_v22  ;;  %v366_v39 = vld [vmem:[#allocation5 + $0x38] sm:$0xff]  ;;  %v380_v41 = vld [vmem:[#allocation5 + $0xa0] sm:$0xff]  ;;  %v381_v42 = vld [vmem:[#allocation5 + $0xa8] sm:$0xff]  ;;  %v335_v22 = vlaneseq  ;;  %s1591_s11 = sshll.u32 %s1666_s25, 4  ;;  %s1592_s11 = int_to_ptr.vmem [resolvable:$false] %s1591_s11 }
  0x5b   : > { %1336 = vmatprep.subr.bf16.mxu1 %v1335_v18  ;;  %v1321_v40 = vpack.c.bf16 %v366_v39, %v365_v38  ;;  %v1343_v43 = vpack.c.bf16 %v381_v42, %v380_v41  ;;  %v367_v44 = vld [vmem:[#allocation5 + $0x40] sm:$0xff]  ;;  %v368_v45 = vld [vmem:[#allocation5 + $0x48] sm:$0xff]  ;;  %v382_v47 = vld [vmem:[#allocation5 + $0xb0] sm:$0xff]  ;;  %p1589_p6 = pnand %p1588_p4, %p1788_p12  ;;  %s1593_s30 = scalar_lea.vmem %s1592_s11, 32 }
  0x5c   : > { %v290_v5 = vrot.slane %v289_v4, 2  ;;  %1338 = vmatpush3.bf16.msra.mxu1 %v1335_v18  ;;  %v1324_v46 = vpack.c.bf16 %v368_v45, %v367_v44  ;;  %v383_v48 = vld [vmem:[#allocation5 + $0xb8] sm:$0xff]  ;;  %v369_v50 = vld [vmem:[#allocation5 + $0x50] sm:$0xff]  ;;  %v384_v53 = vld [vmem:[#allocation5 + $0xc0] sm:$0xff]  ;;  %p1594_p11 = scmp.lt.s32.totalorder %s2039_s27, %s1592_s11  ;;  %p1595_p13 = scmp.lt.s32.totalorder %s1593_s30, %s1587_s10 }
  0x5d   : > { %1340 = vmatprep.subr.bf16.mxu1 %v1339_v24  ;;  %1316 = vmatpush3.bf16.msra.mxu0 %v1315_v20  ;;  %v1347_v49 = vpack.c.bf16 %v383_v48, %v382_v47  ;;  %v370_v51 = vld [vmem:[#allocation5 + $0x58] sm:$0xff]  ;;  %v385_v54 = vld [vmem:[#allocation5 + $0xc8] sm:$0xff]  ;;  %v371_v56 = vld [vmem:[#allocation5 + $0x60] sm:$0xff]  ;;  %p1590_p8 = pneg %p1589_p6 }
  0x5e   : > { %v291_v6 = vadd.f32 %v290_v5, %v289_v4  ;;  %1317 = vmatprep.subr.bf16.mxu0 %v1663_v13  ;;  %v1327_v52 = vpack.c.bf16 %v370_v51, %v369_v50  ;;  %v1351_v55 = vpack.c.bf16 %v385_v54, %v384_v53  ;;  %v372_v57 = vld [vmem:[#allocation5 + $0x68] sm:$0xff]  ;;  %v386_v58 = vld [vmem:[#allocation5 + $0xd0] sm:$0xff]  ;;  %v387_v60 = vld [vmem:[#allocation5 + $0xd8] sm:$0xff]  ;;  %p1596_p3 = por %p1595_p13, %p1594_p11 }
  0x5f   : > { %v1330_v59 = vpack.c.bf16 %v372_v57, %v371_v56  ;;  %v373_v61 = vld [vmem:[#allocation5 + $0x70] sm:$0xff]  ;;  %v1355_v63 = vpack.c.bf16 %v387_v60, %v386_v58  ;;  %v389_v2 = vld [vmem:[#allocation5 + $0xe8] sm:$0xff]  ;;  %v393_v3 = vld [vmem:[#allocation5 + $0x100] sm:$0xff] }
  0x60   : > { %v292_v7 = vrot.slane %v291_v6, 1  ;;  %1342 = vmatpush3.bf16.msra.mxu1 %v1339_v24  ;;  %v394_v4 = vld [vmem:[#allocation5 + $0x108] sm:$0xff]  ;;  %v630_v11 = vld [vmem:[%s2084_s4] sm:$0xff]  ;;  %v632_v54 = vld [vmem:[%s2084_s4 + $0x10] sm:$0xff]  ;;  %p1597_p7 = pnand %p1596_p3, %p1590_p8 }
  0x61   : > { %1319 = vmatpush3.bf16.msra.mxu0 %v1318_v25  ;;  %1344 = vmatprep.subr.bf16.mxu1 %v1343_v43  ;;  %v631_v12 = vld [vmem:[%s2084_s4 + $0x8] sm:$0xff]  ;;  %v1882_v25 = vshrl.u32 %v335_v22, 7  ;;  %v397_v50 = vld [vmem:[#allocation5 + $0x120] sm:$0xff]  ;;  %v399_v58 = vld [vmem:[#allocation5 + $0x130] sm:$0xff] }
  0x62   : > { %v293_v8 = vadd.f32 %v292_v7, %v291_v6  ;;  %1320 = vmatprep.subr.bf16.mxu0 %v1663_v13  ;;  %v1367_v7 = vpack.c.bf16 %v394_v4, %v393_v3  ;;  %v1879_v14 = vpack.c.bf16 %v631_v12, %v630_v11  ;;  %v398_v51 = vld [vmem:[#allocation5 + $0x128] sm:$0xff]  ;;  %v636_v4 = vld [vmem:[%s2084_s4 + $0x30] sm:$0xff] }
  0x63   : > { %v355_v38 = vsub.s32 5, %v1882_v25  ;;  %v1375_v57 = vpack.c.bf16 %v398_v51, %v397_v50  ;;  %v639_v11 = vld [vmem:[%s2084_s4 + $0x48] sm:$0xff]  ;;  %v849_v50 = vld [vmem:[%s2083_s3 + $0x18] sm:$0xff] }
  0x64   : > { %v295_v9 = vmul.f32 0.0625, %v293_v8  ;;  %1346 = vmatpush3.bf16.msra.mxu1 %v1343_v43  ;;  %v390_v8 = vld [vmem:[#allocation5 + $0xf0] sm:$0xff] }
  0x65   : > { %1322 = vmatpush3.bf16.msra.mxu0 %v1321_v40  ;;  %1348 = vmatprep.subr.bf16.mxu1 %v1347_v49 }
  0x66   : > { %296 = vadd.xlane.f32.xlu0 %v295_v9  ;;  %1323 = vmatprep.subr.bf16.mxu0 %v1663_v13 }
  0x68   : > { %1350 = vmatpush3.bf16.msra.mxu1 %v1347_v49 }
  0x69   : > { %1325 = vmatpush3.bf16.msra.mxu0 %v1324_v46  ;;  %1352 = vmatprep.subr.bf16.mxu1 %v1351_v55 }
  0x6a   : > { %313 = vadd.xlane.f32.xlu0 %v284_v0  ;;  %1326 = vmatprep.subr.bf16.mxu0 %v1663_v13 }
  0x6c   : > { %1354 = vmatpush3.bf16.msra.mxu1 %v1351_v55 }
  0x6d   : > { %1328 = vmatpush3.bf16.msra.mxu0 %v1327_v52  ;;  %1356 = vmatprep.subr.bf16.mxu1 %v1355_v63 }
  0x6e   : > { %1329 = vmatprep.subr.bf16.mxu0 %v1663_v13 }
  0x70   : > { %1358 = vmatpush3.bf16.msra.mxu1 %v1355_v63  ;;  %v635_v63 = vld [vmem:[%s2084_s4 + $0x28] sm:$0xff] }
  0x71   : > { %1331 = vmatpush3.bf16.msra.mxu0 %v1330_v59  ;;  %v400_v59 = vld [vmem:[#allocation5 + $0x138] sm:$0xff] }
  0x72   : > { %1332 = vmatprep.subr.bf16.mxu0 %v1663_v13 }
  0xe3   : > { %v316_v26 = vpop.xlane.xlu1 %315 }
  0xe4   : > { %v318_v27 = vmul.f32 0.0078125, %v316_v26  ;;  %v1887_v26 = vld [vmem:[%s2081_s1] sm:$0x7f] }
  0xe5   : > { %v1906_v48 = vrot.slane %v1887_v26, %v355_v38 }
  0xe6   : > { %v1857_v31 = vsub.f32 %v285_v1, %v318_v27  ;;  %v388_v1 = vld [vmem:[#allocation5 + $0xe0] sm:$0xff]  ;;  %v337_v27 = vsub.s32 2, %v1882_v25 }
  0xe7   : > { %v1359_v5 = vpack.c.bf16 %v389_v2, %v388_v1  ;;  %v401_v1 = vld [vmem:[#allocation5 + $0x140] sm:$0xff]  ;;  %v402_v2 = vld [vmem:[#allocation5 + $0x148] sm:$0xff] }
  0xe8   : > { %v322_v36 = vmul.f32 %v1857_v31, %v1857_v31  ;;  %v338_v40 = vrot.slane %v1887_v26, %v337_v27 }
  0xe9   : > { %1360 = vmatprep.subr.bf16.mxu1 %v1359_v5 }
  0xea   : > { %1362 = vmatpush3.bf16.msra.mxu1 %v1359_v5  ;;  %v637_v5 = vld [vmem:[%s2084_s4 + $0x38] sm:$0xff] }
  0xf3   : > { %v297_v28 = vpop.xlane.xlu0 %296 }
  0xf4   : > { %v299_v29 = vmul.f32 0.0078125, %v297_v28 }
  0xf6   : > { %v1855_v30 = vsub.f32 %v295_v9, %v299_v29  ;;  %v391_v9 = vld [vmem:[#allocation5 + $0xf8] sm:$0xff]  ;;  %v349_v29 = vsub.s32 4, %v1882_v25 }
  0xf7   : > { %v314_v32 = vpop.xlane.xlu0 %313  ;;  %v1363_v10 = vpack.c.bf16 %v391_v9, %v390_v8  ;;  %v404_v8 = vld [vmem:[#allocation5 + $0x158] sm:$0xff]  ;;  %v1411_v9 = vpack.c.bf16 %v637_v5, %v636_v4 }
  0xf8   : > { %v317_v33 = vmul.f32 0.0078125, %v314_v32  ;;  %v301_v34 = vmul.f32 %v1855_v30, %v1855_v30  ;;  %v1898_v42 = vrot.slane %v1887_v26, %v349_v29  ;;  %v643_v29 = vld [vmem:[%s2084_s4 + $0x68] sm:$0xff] }
  0xf9   : > { %1364 = vmatprep.subr.bf16.mxu1 %v1363_v10 }
  0xfa   : > { %v1861_v35 = vsub.f32 %v284_v0, %v317_v33  ;;  %302 = vadd.xlane.f32.xlu1 %v301_v34  ;;  %v374_v0 = vld [vmem:[#allocation5 + $0x78] sm:$0xff]  ;;  %1366 = vmatpush3.bf16.msra.mxu1 %v1363_v10  ;;  %v310_v33 = vrot.slane %v1887_v26, 1  ;;  %v343_v34 = vsub.s32 3, %v1882_v25  ;;  %v638_v10 = vld [vmem:[%s2084_s4 + $0x40] sm:$0xff] }
  0xfb   : > { %v1333_v6 = vpack.c.bf16 %v374_v0, %v373_v61  ;;  %1400 = vmatprep.subr.bf16.mxu1 %v1879_v14  ;;  %v634_v61 = vld [vmem:[%s2084_s4 + $0x20] sm:$0xff]  ;;  %v1379_v0 = vpack.c.bf16 %v400_v59, %v399_v58 }
  0xfc   : > { %v321_v37 = vmul.f32 %v1861_v35, %v1861_v35  ;;  %v1407_v3 = vpack.c.bf16 %v635_v63, %v634_v61 }
  0xfd   : > { %1334 = vmatpush3.bf16.msra.mxu0 %v1333_v6  ;;  %v1383_v6 = vpack.c.bf16 %v402_v2, %v401_v1 }
  0xfe   : > { %325 = vadd.xlane.f32.xlu1 %v322_v36  ;;  %323 = vadd.xlane.f32.xlu0 %v321_v37  ;;  %v395_v36 = vld [vmem:[#allocation5 + $0x110] sm:$0xff]  ;;  %v396_v37 = vld [vmem:[#allocation5 + $0x118] sm:$0xff] }
  0xff   : > { %1368 = vmatprep.subr.bf16.mxu0 %v1367_v7  ;;  %v1371_v45 = vpack.c.bf16 %v396_v37, %v395_v36  ;;  %v648_v37 = vsub.s32 0, %v1882_v25  ;;  %v755_v25 = vld [vmem:[%s2085_s5] sm:$0xff] }
 0x187   : > { %v303_v15 = vpop.xlane.xlu1 %302 }
 0x188   : > { %v304_v16 = vmul.f32 0.0078125, %v303_v15  ;;  %v406_v15 = vld [vmem:[#allocation5 + $0x168] sm:$0xff] }
 0x18a   : > { %v305_v17 = vadd.f32 1e-05, %v304_v16  ;;  %v1415_v16 = vpack.c.bf16 %v639_v11, %v638_v10 }
 0x18b   : > { %v326_v18 = vpop.xlane.xlu1 %325  ;;  %v324_v19 = vpop.xlane.xlu0 %323 }
 0x18c   : > { %1517 = vrsqrt.f32 %v305_v17  ;;  %v328_v20 = vmul.f32 0.0078125, %v326_v18  ;;  %v327_v21 = vmul.f32 0.0078125, %v324_v19  ;;  %v640_v17 = vld [vmem:[%s2084_s4 + $0x50] sm:$0xff]  ;;  %v641_v18 = vld [vmem:[%s2084_s4 + $0x58] sm:$0xff] }
 0x18d   : > { %v1419_v22 = vpack.c.bf16 %v641_v18, %v640_v17 }
 0x18e   : > { %v330_v23 = vadd.f32 1e-05, %v328_v20  ;;  %v329_v24 = vadd.f32 1e-05, %v327_v21  ;;  %v407_v20 = vld [vmem:[#allocation5 + $0x170] sm:$0xff]  ;;  %v408_v21 = vld [vmem:[#allocation5 + $0x178] sm:$0xff] }
 0x190   : > { %1519 = vrsqrt.f32 %v330_v23  ;;  %v1395_v23 = vpack.c.bf16 %v408_v21, %v407_v20 }
 0x191   : > { %1521 = vrsqrt.f32 %v329_v24 }
 0x196   : > { %v1518_v28 = vpop.eup %1517 }
 0x197   : > { %v307_v32 = vmul.f32 %v1518_v28, %v1855_v30  ;;  %v344_v30 = vrot.slane %v1887_v26, %v343_v34  ;;  %v642_v28 = vld [vmem:[%s2084_s4 + $0x60] sm:$0xff]  ;;  %v645_v34 = vld [vmem:[%s2084_s4 + $0x78] sm:$0xff] }
 0x199   : > { %v308_v39 = vmul.f32 %v307_v32, %v1887_v26  ;;  %v1423_v32 = vpack.c.bf16 %v643_v29, %v642_v28  ;;  %v856_v28 = vld [vmem:[%s2083_s3 + $0x50] sm:$0xff]  ;;  %v857_v29 = vld [vmem:[%s2083_s3 + $0x58] sm:$0xff] }
 0x19a   : > { %v1520_v41 = vpop.eup %1519 }
 0x19b   : > { %v1522_v43 = vpop.eup %1521  ;;  %v312_v44 = vadd.f32 %v310_v33, %v308_v39  ;;  %v1902_v46 = vmul.f32 %v1520_v41, %v1857_v31  ;;  %v633_v31 = vld [vmem:[%s2084_s4 + $0x18] sm:$0xff]  ;;  %v644_v33 = vld [vmem:[%s2084_s4 + $0x70] sm:$0xff] }
 0x19c   : > { %v333_v47 = vmul.f32 %v1522_v43, %v1861_v35  ;;  %v1403_v60 = vpack.c.bf16 %v633_v31, %v632_v54  ;;  %v1427_v36 = vpack.c.bf16 %v645_v34, %v644_v33  ;;  %v852_v31 = vld [vmem:[%s2083_s3 + $0x30] sm:$0xff]  ;;  %v858_v33 = vld [vmem:[%s2083_s3 + $0x60] sm:$0xff]  ;;  %v859_v34 = vld [vmem:[%s2083_s3 + $0x68] sm:$0xff] }
 0x19d   : > { %1164 = vmatmul.mubr.f32.vlgmr.msra.gmra.mrb[0].mxu0 %v312_v44  ;;  %v340_v49 = vmul.f32 %v338_v40, %v1902_v46  ;;  %v352_v24 = vmul.f32 %v1898_v42, %v1902_v46 }
 0x19e   : > { %1370 = vmatpush3.bf16.msra.mxu0 %v1367_v7  ;;  %v339_v52 = vmul.f32 %v338_v40, %v333_v47  ;;  %v351_v53 = vmul.f32 %v1898_v42, %v333_v47  ;;  %v403_v7 = vld [vmem:[#allocation5 + $0x150] sm:$0xff]  ;;  %v846_v47 = vld [vmem:[%s2083_s3] sm:$0xff] }
 0x19f   : > { %1372 = vmatprep.subr.bf16.mxu0 %v1371_v45  ;;  %v346_v35 = vadd.f32 %v344_v30, %v340_v49  ;;  %v1387_v12 = vpack.c.bf16 %v404_v8, %v403_v7  ;;  %v358_v27 = vadd.f32 %v1906_v48, %v352_v24  ;;  %v855_v24 = vld [vmem:[%s2083_s3 + $0x48] sm:$0xff] }
 0x1a0   : > { %v345_v55 = vadd.f32 %v344_v30, %v339_v52  ;;  %v357_v56 = vadd.f32 %v1906_v48, %v351_v53  ;;  %v847_v48 = vld [vmem:[%s2083_s3 + $0x8] sm:$0xff]  ;;  %v850_v52 = vld [vmem:[%s2083_s3 + $0x20] sm:$0xff] }
 0x1a1   : > { %v1432_v49 = vpack.c.bf16 %v847_v48, %v846_v47  ;;  %v851_v53 = vld [vmem:[%s2083_s3 + $0x28] sm:$0xff] }
 0x1a2   : > { %1198 = vmatprep.mubr.f32.mxu1 %v345_v55  ;;  %1374 = vmatpush3.bf16.msra.mxu0 %v1371_v45  ;;  %v1438_v54 = vpack.c.bf16 %v851_v53, %v850_v52 }
 0x1a3   : > { %1233 = vmatprep.mubr.f32.mxu0 %v357_v56  ;;  %1199 = vmatmul.mubr.f32.vlgmr.msra.gmra.mrb[0].mxu1 %v346_v35  ;;  %v853_v35 = vld [vmem:[%s2083_s3 + $0x38] sm:$0xff] }
 0x1a4   : > { %1376 = vmatprep.subr.bf16.mxu0 %v1375_v57  ;;  %1402 = vmatpush3.bf16.msra.mxu1 %v1879_v14  ;;  %v405_v14 = vld [vmem:[#allocation5 + $0x160] sm:$0xff]  ;;  %v1441_v55 = vpack.c.bf16 %v853_v35, %v852_v31 }
 0x1a5   : > { %1404 = vmatprep.subr.bf16.mxu1 %v1403_v60  ;;  %v1391_v19 = vpack.c.bf16 %v406_v15, %v405_v14 }
 0x1a6   : > { %1378 = vmatpush3.bf16.msra.mxu0 %v1375_v57 }
 0x1a7   : > { %1380 = vmatprep.subr.bf16.mxu0 %v1379_v0 }
 0x1a8   : > { %1406 = vmatpush3.bf16.msra.mxu1 %v1403_v60 }
 0x1a9   : > { %1408 = vmatprep.subr.bf16.mxu1 %v1407_v3 }
 0x1aa   : > { %1382 = vmatpush3.bf16.msra.mxu0 %v1379_v0 }
 0x1ab   : > { %1384 = vmatprep.subr.bf16.mxu0 %v1383_v6 }
 0x1ac   : > { %1410 = vmatpush3.bf16.msra.mxu1 %v1407_v3 }
 0x1ad   : > { %1412 = vmatprep.subr.bf16.mxu1 %v1411_v9 }
 0x1ae   : > { %1386 = vmatpush3.bf16.msra.mxu0 %v1383_v6 }
 0x1af   : > { %1388 = vmatprep.subr.bf16.mxu0 %v1387_v12 }
 0x1b0   : > { %1414 = vmatpush3.bf16.msra.mxu1 %v1411_v9 }
 0x1b1   : > { %1416 = vmatprep.subr.bf16.mxu1 %v1415_v16 }
 0x1b2   : > { %1390 = vmatpush3.bf16.msra.mxu0 %v1387_v12 }
 0x1b3   : > { %1392 = vmatprep.subr.bf16.mxu0 %v1391_v19 }
 0x1b4   : > { %1418 = vmatpush3.bf16.msra.mxu1 %v1415_v16 }
 0x1b5   : > { %1420 = vmatprep.subr.bf16.mxu1 %v1419_v22 }
 0x1b6   : > { %1394 = vmatpush3.bf16.msra.mxu0 %v1391_v19 }
 0x1b7   : > { %1396 = vmatprep.subr.bf16.mxu0 %v1395_v23 }
 0x1b8   : > { %1422 = vmatpush3.bf16.msra.mxu1 %v1419_v22 }
 0x1b9   : > { %1424 = vmatprep.subr.bf16.mxu1 %v1423_v32 }
 0x1ba   : > { %1398 = vmatpush3.bf16.msra.mxu0 %v1395_v23  ;;  %v854_v23 = vld [vmem:[%s2083_s3 + $0x40] sm:$0xff] }
 0x1bb   : > { %1271 = vmatprep.subr.mxu0 %v755_v25 }
 0x1bc   : > { %1426 = vmatpush3.bf16.msra.mxu1 %v1423_v32  ;;  %v1447_v32 = vpack.c.bf16 %v857_v29, %v856_v28 }
 0x1bd   : > { %1234 = vmatmul.mubr.f32.vlgmr.msra.gmra.mrb[2].mxu0 %v358_v27  ;;  %1428 = vmatprep.subr.bf16.mxu1 %v1427_v36  ;;  %v1444_v27 = vpack.c.bf16 %v855_v24, %v854_v23 }
 0x1be   : > { %1272 = vmatpush3.msra.mxu0 %v755_v25 }
 0x1c0   : > { %1430 = vmatpush3.bf16.msra.mxu1 %v1427_v36  ;;  %v1450_v36 = vpack.c.bf16 %v859_v34, %v858_v33 }
 0x1c1   : > { %1431 = vmatprep.subr.bf16.mxu1 %v1663_v13 }
 0x270   : > { %v475_v38 = vpop.f32.mrb[0].mxu0 }
 0x271   : > { %v479_v39 = vmul.f32 0.25, %v475_v38  ;;  %v1165_v40 = vpop.f32.mrb[1].mxu0  ;;  %v861_v38 = vld [vmem:[%s2083_s3 + $0x78] sm:$0xff] }
 0x273   : > { %v649_v41 = vrot.slane %v479_v39, %v648_v37  ;;  %v860_v37 = vld [vmem:[%s2083_s3 + $0x70] sm:$0xff] }
 0x274   : > { %v1453_v39 = vpack.c.bf16 %v861_v38, %v860_v37 }
 0x276   : > { %v1200_v42 = vpop.f32.mrb[0].mxu1 }
 0x277   : > { %v651_v43 = vmul.f32 %v1200_v42, %v649_v41  ;;  %v546_v44 = vpop.f32.mrb[1].mxu1 }
 0x278   : > { %v650_v45 = vmul.f32 %v649_v41, %v546_v44 }
 0x27a   : > { %1268 = vmatprep.mubr.f32.mxu1 %v650_v45 }
 0x27b   : > { %1269 = vmatmul.mubr.f32.vlgmr.msra.gmra.mrb[2].mxu1 %v651_v43 }
 0x27c   : > { %1308 = vmatprep.mubr.msk.f32.mxu1 %vm1664_vm0, %v1665_v62  ;;  %v848_v62 = vld [vmem:[%s2083_s3 + $0x10] sm:$0xff]  ;;  %1433 = vmatpush3.bf16.msra.mxu1 %v1432_v49  ;;  %v862_v49 = vrot.slane %v1887_v26, 6 }
 0x27d   : > { %v1435_v51 = vpack.c.bf16 %v849_v50, %v848_v62  ;;  %1434 = vmatprep.subr.bf16.mxu1 %v1663_v13 }
 0x280   : > { %1436 = vmatpush3.bf16.msra.mxu1 %v1435_v51 }
 0x281   : > { %1437 = vmatprep.subr.bf16.mxu1 %v1663_v13 }
 0x284   : > { %1439 = vmatpush3.bf16.msra.mxu1 %v1438_v54 }
 0x285   : > { %1440 = vmatprep.subr.bf16.mxu1 %v1663_v13 }
 0x288   : > { %1442 = vmatpush3.bf16.msra.mxu1 %v1441_v55 }
 0x289   : > { %1443 = vmatprep.subr.bf16.mxu1 %v1663_v13 }
 0x28c   : > { %1445 = vmatpush3.bf16.msra.mxu1 %v1444_v27 }
 0x28d   : > { %1446 = vmatprep.subr.bf16.mxu1 %v1663_v13 }
 0x290   : > { %v1961_v30 = vpop.f32.mrb[2].mxu0  ;;  %1448 = vmatpush3.bf16.msra.mxu1 %v1447_v32 }
 0x291   : > { %v1963_v46 = vpop.f32.mrb[3].mxu0  ;;  %1449 = vmatprep.subr.bf16.mxu1 %v1663_v13 }
 0x294   : > { %1451 = vmatpush3.bf16.msra.mxu1 %v1450_v36 }
 0x295   : > { %1452 = vmatprep.subr.bf16.mxu1 %v1663_v13 }
 0x298   : > { %1454 = vmatpush3.bf16.msra.mxu1 %v1453_v39 }
 0x34e   : > { %v1270_v56 = vpop.f32.mrb[2].mxu1 }
 0x34f   : > { %v729_v57 = vsel %vm727_vm1, %v1270_v56, -inf  ;;  %v718_v58 = vpop.f32.mrb[3].mxu1 }
 0x350   : > { %v728_v59 = vsel %vm727_vm1, %v718_v58, -inf }
 0x351   : > { %v730_v60 = vmax.f32 %v728_v59, %v729_v57 }
 0x353   : > { %v731_v61 = vrot.slane %v730_v60, 4 }
 0x355   : > { %v732_v63 = vmax.f32 %v730_v60, %v731_v61 }
 0x357   : > { %v733_v0 = vrot.slane %v732_v63, 2 }
 0x359   : > { %v734_v1 = vmax.f32 %v732_v63, %v733_v0 }
 0x35b   : > { %v735_v2 = vrot.slane %v734_v1, 1 }
 0x35d   : > { %v736_v3 = vmax.f32 %v734_v1, %v735_v2 }
 0x35f   : > { %v737_v4 = vsub.f32 %v718_v58, %v736_v3  ;;  %v738_v5 = vsub.f32 %v1270_v56, %v736_v3 }
 0x361   : > { %v739_v6 = vmul.f32 1.442695, %v737_v4  ;;  %v741_v7 = vmul.f32 1.442695, %v738_v5 }
 0x363   : > { %1523 = vpow2.f32 %v739_v6 }
 0x364   : > { %1525 = vpow2.f32 %v741_v7 }
 0x36d   : > { %v1524_v8 = vpop.eup %1523 }
 0x36e   : > { %v1526_v9 = vpop.eup %1525  ;;  %v743_v10 = vsel %vm727_vm1, %v1524_v8, 0.0 }
 0x36f   : > { %v744_v11 = vsel %vm727_vm1, %v1526_v9, 0.0 }
 0x370   : > { %v745_v12 = vadd.f32 %v744_v11, %v743_v10 }
 0x372   : > { %v746_v14 = vrot.slane %v745_v12, 4 }
 0x374   : > { %v747_v15 = vadd.f32 %v746_v14, %v745_v12 }
 0x376   : > { %v748_v16 = vrot.slane %v747_v15, 2 }
 0x378   : > { %v749_v17 = vadd.f32 %v748_v16, %v747_v15 }
 0x37a   : > { %v750_v18 = vrot.slane %v749_v17, 1 }
 0x37c   : > { %v751_v19 = vadd.f32 %v750_v18, %v749_v17 }
 0x37e   : > { %1527 = vrcp.f32 %v751_v19 }
 0x388   : > { %v1528_v20 = vpop.eup %1527 }
 0x389   : > { %v753_v21 = vmul.f32 %v1528_v20, %v1524_v8  ;;  %v754_v22 = vmul.f32 %v1528_v20, %v1526_v9 }
 0x38b   : > { %1273 = vmatprep.mubr.msk.f32.mxu0 %vm727_vm1, %v753_v21 }
 0x38c   : > { %1274 = vmatmul.mubr.msk.f32.vlgmr.msra.gmra.mrb[4].mxu0 %vm727_vm1, %v754_v22 }
 0x45f   : > { %v1275_v40 = vpop.f32.mrb[4].mxu0 }
 0x460   : > { %v838_v41 = vmul.f32 %v1275_v40, %v1961_v30  ;;  %v828_v42 = vpop.f32.mrb[5].mxu0 }
 0x461   : > { %v837_v43 = vmul.f32 %v828_v42, %v1963_v46 }
 0x463   : > { %v839_v44 = vadd.f32 %v838_v41, %v837_v43 }
 0x465   : > { %v840_v13 = vrot.slane %v839_v44, 4 }
 0x467   : > { %v841_v45 = vadd.f32 %v840_v13, %v839_v44 }
 0x469   : > { %v842_v25 = vrot.slane %v841_v45, 2 }
 0x46b   : > { %v843_v47 = vadd.f32 %v842_v25, %v841_v45 }
 0x46d   : > { %v844_v48 = vrot.slane %v843_v47, 1 }
 0x46f   : > { %v845_v62 = vadd.f32 %v844_v48, %v843_v47 }
 0x471   : > { %1309 = vmatmul.mubr.f32.vlgmr.msra.gmra.mrb[4].mxu1 %v845_v62 }
 0x544   : > { %v930_v50 = vpop.f32.mrb[4].mxu1 }
 0x545   : > { %v931_v30 = vadd.f32 %v930_v50, %v862_v49  ;;  %v1310_v51 = vpop.f32.mrb[5].mxu1 }
 0x547   : > { %934 = vst [vmem:[%s283_s8] sm:$0x1] %v931_v30 }
 0x548   : > { %1600 = shalt.err (!%p1597_p7)
}
 0x549   : > { %s1601_s12 = scalar_lea.hbm %s2037_s26, 16  ;;  %s1605_s18 = scalar_lea.hbm %s2086_s6, 64 }
 0x54a   : > { %p1602_p9 = scmp.ne.s32.totalorder %s2037_s26, %s1601_s12  ;;  %p1606_p5 = scmp.lt.u32.totalorder %s2037_s26, %s2086_s6 }
 0x54b   : > { %p1607_p2 = scmp.lt.u32.totalorder %s1605_s18, %s1601_s12  ;;  %p1609_p4 = scmp.lt.u32.totalorder %s1601_s12, %s2037_s26 }
 0x54c   : > { %p1603_p1 = pnand %p1602_p9, %p1788_p12 }
 0x54d   : > { %p1608_p10 = por %p1607_p2, %p1606_p5 }
 0x54e   : > { %p1604_p0 = pneg %p1603_p1 }
 0x54f   : > { %p1610_p6 = por %p1609_p4, %p1608_p10 }
 0x551   : > { %p1611_p8 = pnand %p1610_p6, %p1604_p0 }
 0x553   : > { %1614 = shalt.err (!%p1611_p8)
}
 0x554   : > { %1461 = dma.vmem_to_hbm [thread:$0]  (%p1788_p12), %s2039_s27, 16, %s2037_s26, %s936_s19  }
 0x555 PF: > { %p1478_p11 = scmp.ge.s32.totalorder %s1657_s24, 2  ;;  %s960_s8 = sand.u32 1, %s1645_s21  }
 0x556   : > { %p2101_p13 = scmp.ne.s32.totalorder %s2091_s28, 0  ;;  %s961_s29 = scalar_lea.sflag [#allocation4], %s960_s8 }
 0x558   : > { %p1472_p3 = pnand %p1478_p11, %p2101_p13 }
 0x55a   : > { %1640 = dma.done.wait (!%p1472_p3), %s961_s29, 16  }
 0x55b   : > { %1642 = vsyncadd (!%p1472_p3), %s961_s29, 4294967280  ;;  %p20_p7 = scmp.ge.s32.totalorder %s1755_s9, 6   ;;  %s2102_s21 = smov %s1649_s22 }
 0x55c   : > { %s2103_s22 = smov %s1653_s23  ;;  %s2104_s23 = smov %s1784_s13 }
 0x55d   : > { %s2105_s24 = smov %s1755_s9  ;;  %22 = sbr.rel (!%p20_p7) target bundleno = 6 (0x6), region = 95 }
 0x564   :  { %965 = vsyncpa [#allocation3], 1 }
 0x565   :  { %967 = vsyncpa [#allocation3 + $0x1], 1 }
 0x566   :  { %968 = vsyncpa [#allocation6], 1 }
 0x567   :  { %969 = vsyncpa [#allocation4], 1 }
 0x568   :  { %971 = vsyncpa [#allocation4 + $0x1], 1 }

</bundles_post_ra>
